<compile_context>
chip_gen: v6e
topology: v6e:2x2x1
jax: 0.10.0
libtpu: 0.0.40
codegen_flags: <defaults>
</compile_context>

<pallas_src>
import functools
import math

import jax
import jax.numpy as jnp
import numpy as np
from jax.experimental import pallas as pl
from jax.experimental.pallas import tpu as pltpu

SUBLANE = 8  # f32 sublane minimum


def _round_up(x, m):
    return ((x + m - 1) // m) * m


# -----------------------------------------------------------------------------
# MADE mask construction (host-side numpy, deterministic, shape-only logic)
# -----------------------------------------------------------------------------
def made_mask(flow_dim, in_features, out_features, mask_type=None):
    """Returns mask of shape (out_features, in_features), float32 in {0,1}."""
    if mask_type == "input":
        in_deg = np.arange(in_features) % flow_dim
    else:
        in_deg = np.arange(in_features) % (flow_dim - 1)
    if mask_type == "output":
        out_deg = np.arange(out_features) % flow_dim - 1
    else:
        out_deg = np.arange(out_features) % (flow_dim - 1)
    return (out_deg[:, None] >= in_deg[None, :]).astype(np.float32)


# -----------------------------------------------------------------------------
# Pallas kernel: (masked) linear -> ReLU -> (masked) linear -> residual add
# Masks are pre-folded into the weights; weights are (in_features, out_features).
# -----------------------------------------------------------------------------
def _shift_kernel(x_ref, w1_ref, b1_ref, w2_ref, b2_ref, z_ref, *, d_in1):
    # x_ref : (TB, D)            w1_ref : (d_in1, H1p)   b1_ref : (1, H1p)
    # w2_ref: (H1p, D)           b2_ref : (1, D)         z_ref  : (TB, D)
    x = x_ref[...]
    # MADE 'input' mask only connects a prefix of the input features; the
    # folded weights were pruned to d_in1 (sublane-aligned) rows, so slice x
    # too (a static lane-prefix slice is cheap on the VPU).
    x1 = x if d_in1 == x.shape[1] else x[:, :d_in1]

    h = jnp.dot(x1, w1_ref[...], preferred_element_type=jnp.float32) + b1_ref[...]
    h = jnp.maximum(h, 0.0)

    shift = jnp.dot(h, w2_ref[...], preferred_element_type=jnp.float32) + b2_ref[...]

    # Fused LowerShiftTransformer residual: z = x + shift
    z_ref[...] = (x + shift).astype(z_ref.dtype)


def _tile_and_vmem():
    """(batch-tile cap, vmem_limit_bytes) sized per TPU generation."""
    try:
        kind = jax.devices()[0].device_kind.lower()
    except Exception:  # be defensive; fall back to conservative settings
        kind = ""
    if ("v5" in kind) or ("v6" in kind):
        # 128 MiB VMEM: bigger blocks amortize per-grid-step overhead.
        return 2048, 96 << 20
    # v7x (64 MiB per TC) or unknown: stay conservative.
    return 1024, 48 << 20


# -----------------------------------------------------------------------------
# Wrapper: full LowerShiftTransformer forward -> (z, log_dets)
# -----------------------------------------------------------------------------
def lower_shift_transformer(x_nchw, kparams):
    B, C, H, W = x_nchw.shape
    D = C * H * W
    w1f, b1p, w2f, b2 = kparams           # folded / padded / pre-transposed
    d_in1, h1p = w1f.shape

    x2d = x_nchw.reshape(B, D)            # torch.flatten(x, start_dim=-3)

    tb_cap, vmem_bytes = _tile_and_vmem()
    # Fixed tile (divisible by 8) when B is large; full batch (full-dim
    # exception) when B is small.  cdiv grid handles ragged last block.
    tb = B if B <= tb_cap else tb_cap
    grid = (pl.cdiv(B, tb),)

    flops = 2 * B * d_in1 * h1p + 2 * B * h1p * D + 2 * B * D
    bytes_accessed = 4 * (2 * B * D + d_in1 * h1p + h1p * D + h1p + D)

    z2d = pl.pallas_call(
        functools.partial(_shift_kernel, d_in1=d_in1),
        out_shape=jax.ShapeDtypeStruct((B, D), jnp.float32),
        grid_spec=pltpu.PrefetchScalarGridSpec(
            num_scalar_prefetch=0,
            grid=grid,
            in_specs=[
                pl.BlockSpec((tb, D), lambda i: (i, 0)),        # x tile
                pl.BlockSpec((d_in1, h1p), lambda i: (0, 0)),   # W1 (resident)
                pl.BlockSpec((1, h1p), lambda i: (0, 0)),       # b1 (resident)
                pl.BlockSpec((h1p, D), lambda i: (0, 0)),       # W2 (resident)
                pl.BlockSpec((1, D), lambda i: (0, 0)),         # b2 (resident)
            ],
            out_specs=pl.BlockSpec((tb, D), lambda i: (i, 0)),  # z tile
        ),
        compiler_params=pltpu.CompilerParams(
            dimension_semantics=("parallel",),
            vmem_limit_bytes=vmem_bytes,
        ),
        cost_estimate=pl.CostEstimate(
            flops=flops, transcendentals=0, bytes_accessed=bytes_accessed),
    )(x2d, w1f, b1p, w2f, b2)

    z = z2d.reshape(B, C, H, W)
    log_dets = jnp.zeros(x_nchw.shape[:-3], x_nchw.dtype)
    return z, log_dets


# -----------------------------------------------------------------------------
# Deterministic parameter construction.
# Returns (torch-layout reference params, kernel params with masks folded,
# weights transposed to (in, out), hidden padded to the sublane minimum and
# layer-1 input pruned to the MADE-effective prefix).
# -----------------------------------------------------------------------------
def init_params(key, c, h, w, hid_dims=(4,)):
    flow_dim = c * h * w
    assert isinstance(hid_dims, tuple) and len(hid_dims) == 1, \
        "this kernel implements the default single-hidden MADE MLP"
    h1 = hid_dims[0]

    k1, k2, k3, k4 = jax.random.split(key, 4)

    def uinit(k, shape, fan_in):
        bound = 1.0 / math.sqrt(fan_in)
        return jax.random.uniform(k, shape, jnp.float32, -bound, bound)

    # torch nn.Linear layout: weight (out, in), bias (out,)
    w1 = uinit(k1, (h1, flow_dim), flow_dim)
    b1 = uinit(k2, (h1,), flow_dim)
    w2 = uinit(k3, (flow_dim, h1), h1)
    b2 = uinit(k4, (flow_dim,), h1)

    m1 = made_mask(flow_dim, flow_dim, h1, mask_type="input")    # (h1, D)
    m2 = made_mask(flow_dim, h1, flow_dim, mask_type="output")   # (D, h1)

    ref_params = (w1, b1, w2, b2, jnp.asarray(m1), jnp.asarray(m2))

    # ---- kernel params: fold masks, transpose to (in, out), prune, pad ----
    w1f = (w1 * jnp.asarray(m1)).T           # (D, h1)
    w2f = (w2 * jnp.asarray(m2)).T           # (h1, D)

    # MADE 'input' mask: only a contiguous prefix of input features is
    # connected (holds because in_features == flow_dim here).
    cols = np.flatnonzero(m1.any(axis=0))
    d_eff = int(cols.max()) + 1 if cols.size else 1
    d_in1 = min(flow_dim, _round_up(d_eff, SUBLANE))
    w1f = w1f[:d_in1]                        # (d_in1, h1) — pruned rows are all-zero

    h1p = _round_up(h1, SUBLANE)             # pad hidden width to the sublane minimum
    w1f = jnp.pad(w1f, ((0, 0), (0, h1p - h1)))
    b1p = jnp.pad(b1, (0, h1p - h1)).reshape(1, h1p)
    w2f = jnp.pad(w2f, ((0, h1p - h1), (0, 0)))
    b2k = b2.reshape(1, flow_dim)

    kparams = (w1f, b1p, w2f, b2k)
    return ref_params, kparams


# -----------------------------------------------------------------------------
# Pure-JAX reference of the PyTorch LowerShiftTransformer forward (msk branch)
# -----------------------------------------------------------------------------
def reference_forward(x_nchw, ref_params):
    w1, b1, w2, b2, m1, m2 = ref_params      # torch layout (out, in)
    B = x_nchw.shape[0]
    x = x_nchw.reshape(B, -1)
    hi = jnp.maximum(
        jnp.dot(x, (w1 * m1).T, precision=jax.lax.Precision.HIGHEST) + b1, 0.0)
    shift = jnp.dot(hi, (w2 * m2).T, precision=jax.lax.Precision.HIGHEST) + b2
    z = (x + shift).reshape(x_nchw.shape)
    log_dets = jnp.zeros(x_nchw.shape[:-3], x_nchw.dtype)
    return z, log_dets


if __name__ == "__main__":
    key = jax.random.PRNGKey(0)
    kx, kp = jax.random.split(key)

    B, C, H, W = 2, 4, 16, 16                # flow_dim = 1024
    x = jax.random.normal(kx, (B, C, H, W), jnp.float32)
    ref_params, kparams = init_params(kp, C, H, W, hid_dims=(4,))

    z, log_dets = lower_shift_transformer(x, kparams)
    z = jax.block_until_ready(z)
    log_dets = jax.block_until_ready(log_dets)

    z_ref, ld_ref = reference_forward(x, ref_params)
    assert z.shape == (B, C, H, W)
    assert log_dets.shape == (B,)
    np.testing.assert_allclose(np.asarray(z), np.asarray(z_ref), rtol=1e-5, atol=1e-5)
    np.testing.assert_allclose(np.asarray(log_dets), np.asarray(ld_ref))

    print("KERNEL_OK")
</pallas_src>

<mosaic_0001>
module attributes {stable_mosaic.version = 11 : i64} {
  func.func @_shift_kernel(%arg0: i32, %arg1: memref<2x1024xf32, #tpu.memory_space<vmem>>, %arg2: memref<8x8xf32, #tpu.memory_space<vmem>>, %arg3: memref<1x8xf32, #tpu.memory_space<vmem>>, %arg4: memref<8x1024xf32, #tpu.memory_space<vmem>>, %arg5: memref<1x1024xf32, #tpu.memory_space<vmem>>, %arg6: memref<2x1024xf32, #tpu.memory_space<vmem>>) attributes {dimension_semantics = [#tpu.dimension_semantics<parallel>], iteration_bounds = array<i64: 1>, scalar_prefetch = 0 : i64, scratch_operands = 0 : i64, tpu.core_type = #tpu.core_type<tc>, window_params = [{transform_indices = @transform_0, window_bounds = array<i64: 2, 1024>}, {pipeline_mode = #tpu.pipeline_mode<synchronous>, transform_indices = @transform_1, window_bounds = array<i64: 8, 8>}, {pipeline_mode = #tpu.pipeline_mode<synchronous>, transform_indices = @transform_2, window_bounds = array<i64: 1, 8>}, {pipeline_mode = #tpu.pipeline_mode<synchronous>, transform_indices = @transform_3, window_bounds = array<i64: 8, 1024>}, {pipeline_mode = #tpu.pipeline_mode<synchronous>, transform_indices = @transform_4, window_bounds = array<i64: 1, 1024>}, {transform_indices = @transform_5, window_bounds = array<i64: 2, 1024>}]} {
    %c0 = arith.constant 0 : index
    %c0_0 = arith.constant 0 : index
    %0 = vector.load %arg1[%c0, %c0_0] : memref<2x1024xf32, #tpu.memory_space<vmem>>, vector<2x1024xf32>
    %1 = vector.extract_strided_slice %0 {offsets = [0, 0], sizes = [2, 8], strides = [1, 1]} : vector<2x1024xf32> to vector<2x8xf32>
    %c0_1 = arith.constant 0 : index
    %c0_2 = arith.constant 0 : index
    %2 = vector.load %arg2[%c0_1, %c0_2] : memref<8x8xf32, #tpu.memory_space<vmem>>, vector<8x8xf32>
    %cst = arith.constant dense<0.000000e+00> : vector<2x8xf32>
    %3 = tpu.matmul %1, %2, %cst {dimension_numbers = #tpu.dot_dimension_numbers<[1], [0], [0], [1], [0, 0, 1, 1], [], []>} : vector<2x8xf32>, vector<8x8xf32>, vector<2x8xf32> -> vector<2x8xf32>
    %c0_3 = arith.constant 0 : index
    %c0_4 = arith.constant 0 : index
    %4 = vector.load %arg3[%c0_3, %c0_4] : memref<1x8xf32, #tpu.memory_space<vmem>>, vector<1x8xf32>
    %5 = vector.broadcast %4 : vector<1x8xf32> to vector<2x8xf32>
    %6 = arith.addf %3, %5 : vector<2x8xf32>
    %cst_5 = arith.constant 0.000000e+00 : f32
    %7 = vector.broadcast %cst_5 : f32 to vector<2x8xf32>
    %8 = arith.maximumf %6, %7 : vector<2x8xf32>
    %c0_6 = arith.constant 0 : index
    %c0_7 = arith.constant 0 : index
    %9 = vector.load %arg4[%c0_6, %c0_7] : memref<8x1024xf32, #tpu.memory_space<vmem>>, vector<8x1024xf32>
    %cst_8 = arith.constant dense<0.000000e+00> : vector<2x1024xf32>
    %10 = tpu.matmul %8, %9, %cst_8 {dimension_numbers = #tpu.dot_dimension_numbers<[1], [0], [0], [1], [0, 0, 1, 1], [], []>} : vector<2x8xf32>, vector<8x1024xf32>, vector<2x1024xf32> -> vector<2x1024xf32>
    %c0_9 = arith.constant 0 : index
    %c0_10 = arith.constant 0 : index
    %11 = vector.load %arg5[%c0_9, %c0_10] : memref<1x1024xf32, #tpu.memory_space<vmem>>, vector<1x1024xf32>
    %12 = vector.broadcast %11 : vector<1x1024xf32> to vector<2x1024xf32>
    %13 = arith.addf %10, %12 : vector<2x1024xf32>
    %14 = arith.addf %0, %13 : vector<2x1024xf32>
    %c0_11 = arith.constant 0 : index
    %c0_12 = arith.constant 0 : index
    %15 = vector.load %arg6[%c0_11, %c0_12] : memref<2x1024xf32, #tpu.memory_space<vmem>>, vector<2x1024xf32>
    tpu.vector_store %arg6[%c0_11, %c0_12], %14 {strides = array<i32>} : memref<2x1024xf32, #tpu.memory_space<vmem>>, vector<2x1024xf32>,
    return
  }
  func.func @transform_0(%arg0: i32) -> (i32, i32) {
    %c0_i32 = arith.constant 0 : i32
    %c0_i32_0 = arith.constant 0 : i32
    return %arg0, %c0_i32 : i32, i32
  }
  func.func @transform_1(%arg0: i32) -> (i32, i32) {
    %c0_i32 = arith.constant 0 : i32
    %c0_i32_0 = arith.constant 0 : i32
    %c0_i32_1 = arith.constant 0 : i32
    return %c0_i32, %c0_i32_0 : i32, i32
  }
  func.func @transform_2(%arg0: i32) -> (i32, i32) {
    %c0_i32 = arith.constant 0 : i32
    %c0_i32_0 = arith.constant 0 : i32
    %c0_i32_1 = arith.constant 0 : i32
    return %c0_i32, %c0_i32_0 : i32, i32
  }
  func.func @transform_3(%arg0: i32) -> (i32, i32) {
    %c0_i32 = arith.constant 0 : i32
    %c0_i32_0 = arith.constant 0 : i32
    %c0_i32_1 = arith.constant 0 : i32
    return %c0_i32, %c0_i32_0 : i32, i32
  }
  func.func @transform_4(%arg0: i32) -> (i32, i32) {
    %c0_i32 = arith.constant 0 : i32
    %c0_i32_0 = arith.constant 0 : i32
    %c0_i32_1 = arith.constant 0 : i32
    return %c0_i32, %c0_i32_0 : i32, i32
  }
  func.func @transform_5(%arg0: i32) -> (i32, i32) {
    %c0_i32 = arith.constant 0 : i32
    %c0_i32_0 = arith.constant 0 : i32
    return %arg0, %c0_i32 : i32, i32
  }
}

</mosaic_0001>

<bundles_post_ra>
// kernel: tpu_custom_call.1
= control target key start
LH: loop header
LB: loop body
LE: loop exit
PB: predicated region body
PF: predicated region fallthrough
CT: control target
= control target key end

     0   :  { %10 = vsyncpa [#allocation3], 0  ;;  %s749_s0 = inlined_call_operand.hbm [shape: f32[2,1024], index: 0, kind: input, shape index: {}]   ;;  %s750_s1 = inlined_call_operand.hbm [shape: f32[8,8], index: 1, kind: input, shape index: {}]   ;;  %s751_s2 = inlined_call_operand.vmem [shape: f32[1,8], index: 2, kind: input, shape index: {}]   ;;  %s752_s3 = inlined_call_operand.hbm [shape: f32[8,1024], index: 3, kind: input, shape index: {}]   ;;  %s753_s4 = inlined_call_operand.hbm [shape: f32[1,1024], index: 4, kind: input, shape index: {}]   ;;  %s754_s5 = inlined_call_operand.hbm [shape: f32[2,1024], index: 5, kind: output, shape index: {}]  }
   0x1   :  { %11 = vsyncpa [#allocation6], 0 }
   0x2   :  { %12 = vsyncpa [#allocation9], 0 }
   0x3   :  { %13 = vsyncpa [#allocation4], 0  ;;  %s684_s18 = smov [#allocation5]   ;;  %s685_s20 = smov [#allocation2]  }
   0x4   :  { %s30_s19 = sshll.u32 %s684_s18, 4  ;;  %s20_s21 = sshll.u32 %s685_s20, 4  ;;  %s31_s19 = int_to_ptr.vmem [resolvable:$true] %s30_s19  ;;  %s21_s21 = int_to_ptr.vmem [resolvable:$true] %s20_s21 }
   0x5   :  { %s584_s22 = scalar_lea.vmem %s31_s19, 128  ;;  %p589_p1 = scmp.lt.s32.totalorder %s31_s19, %s31_s19 }
   0x6   :  { %p585_p0 = scmp.ne.s32.totalorder %s31_s19, %s584_s22  ;;  %p590_p2 = scmp.lt.s32.totalorder %s584_s22, %s584_s22 }
   0x8   :  { %p591_p3 = por %p590_p2, %p589_p1 }
   0xa   :  { %p592_p4 = pnand %p591_p3, %p585_p0 }
   0xc   :  { %595 = shalt.err (!%p592_p4)
}
   0xd   :  { %33 = dma.hbm_to_vmem [thread:$0]  %s750_s1, 128, %s31_s19, [#allocation6]  }
   0xe   :  { %s604_s25 = scalar_lea.vmem %s21_s21, 256  ;;  %p609_p6 = scmp.lt.s32.totalorder %s21_s21, %s21_s21 }
   0xf   :  { %p605_p5 = scmp.ne.s32.totalorder %s21_s21, %s604_s25  ;;  %p610_p7 = scmp.lt.s32.totalorder %s604_s25, %s604_s25 }
  0x11   :  { %p611_p8 = por %p610_p7, %p609_p6 }
  0x13   :  { %p612_p9 = pnand %p611_p8, %p605_p5 }
  0x15   :  { %615 = shalt.err (!%p612_p9)
}
  0x16   :  { %23 = dma.hbm_to_vmem [thread:$0]  %s749_s0, 256, %s21_s21, [#allocation3]  }
  0x17   :  { %s686_s28 = smov [#allocation7]   ;;  %s687_s30 = smov [#allocation8]  }
  0x18   :  { %s42_s29 = sshll.u32 %s686_s28, 4  ;;  %s52_s6 = sshll.u32 %s687_s30, 4  ;;  %s43_s29 = int_to_ptr.vmem [resolvable:$true] %s42_s29  ;;  %s53_s6 = int_to_ptr.vmem [resolvable:$true] %s52_s6 }
  0x19   :  { %s624_s7 = scalar_lea.vmem %s43_s29, 1024  ;;  %p629_p11 = scmp.lt.s32.totalorder %s43_s29, %s43_s29 }
  0x1a   :  { %p625_p10 = scmp.ne.s32.totalorder %s43_s29, %s624_s7  ;;  %p630_p12 = scmp.lt.s32.totalorder %s624_s7, %s624_s7 }
  0x1c   :  { %p631_p13 = por %p630_p12, %p629_p11 }
  0x1e   :  { %p632_p0 = pnand %p631_p13, %p625_p10 }
  0x20   :  { %635 = shalt.err (!%p632_p0)
}
  0x21   :  { %45 = dma.hbm_to_vmem [thread:$0]  %s752_s3, 1024, %s43_s29, [#allocation6]  }
  0x22   :  { %s644_s9 = scalar_lea.vmem %s53_s6, 128  ;;  %p649_p2 = scmp.lt.s32.totalorder %s53_s6, %s53_s6 }
  0x23   :  { %p645_p1 = scmp.ne.s32.totalorder %s53_s6, %s644_s9  ;;  %p650_p3 = scmp.lt.s32.totalorder %s644_s9, %s644_s9 }
  0x25   :  { %p651_p4 = por %p650_p3, %p649_p2 }
  0x27   :  { %p652_p5 = pnand %p651_p4, %p645_p1 }
  0x29   :  { %655 = shalt.err (!%p652_p5)
}
  0x2a   :  { %55 = dma.hbm_to_vmem [thread:$0]  %s753_s4, 128, %s53_s6, [#allocation9]  }
  0x2b   :  { %676 = dma.done.wait [#allocation3], 256  }
  0x2c   :  { %677 = vsyncadd [#allocation3], 4294967040 }
  0x2d   :  { %678 = dma.done.wait [#allocation6], 1152  }
  0x2e   :  { %679 = vsyncadd [#allocation6], 4294966144 }
  0x2f   :  { %680 = dma.done.wait [#allocation9], 128  }
  0x30   :  { %681 = vsyncadd [#allocation9], 4294967168  ;;  %v688_v0 = vmov 0.0   ;;  %vm689_vm0 = vmmov 0   ;;  %vm78_vm1 = vcmask 64512   ;;  %v70_v1 = vld [vmem:[#allocation5] sm:$0xff]  ;;  %v163_v16 = vlaneseq }
  0x31   :  { %563 = vmatprep.subr.mxu0 %v688_v0  ;;  %565 = vmatprep.mubr.msk.f32.mxu0 %vm689_vm0, %v688_v0  ;;  %v734_v2 = vld [vmem:[#allocation2] sm:$0xff]  ;;  %v156_v3 = vld [vmem:[#allocation7 + $0x18] sm:$0xff]  ;;  %v155_v5 = vld [vmem:[#allocation7 + $0x10] sm:$0xff]  ;;  %v690_v18 = vmov 1983009808  }
  0x32   :  { %270 = vmatprep.mubr.f32.mxu1 %v688_v0  ;;  %564 = vmatpush3.msra.mxu0 %v70_v1  ;;  %v154_v4 = vld [vmem:[#allocation7 + $0x8] sm:$0xff]  ;;  %v153_v6 = vld [vmem:[#allocation7] sm:$0xff]  ;;  %v160_v8 = vld [vmem:[#allocation7 + $0x38] sm:$0xff]  ;;  %v164_v17 = vshrl.u32 %v163_v16, 7  ;;  %v501_v19 = vunpack.c.l.s4 %v690_v18 }
  0x33   :  { %566 = vmatmul.mubr.msk.f32.vlgmr.msra.gmra.mxu0 %vm78_vm1, %v734_v2  ;;  %307 = vmatprep.subr.mxu0 %v156_v3  ;;  %v158_v7 = vld [vmem:[#allocation7 + $0x28] sm:$0xff]  ;;  %v157_v14 = vld [vmem:[#allocation7 + $0x20] sm:$0xff]  ;;  %v159_v15 = vld [vmem:[#allocation7 + $0x30] sm:$0xff] }
  0x34   :  { %341 = vmatprep.mubr.f32.mxu0 %v688_v0  ;;  %236 = vmatprep.subr.mxu1 %v154_v4  ;;  %v555_v9 = vld [vmem:[%s751_s2] ss:$0 sm:$0xff]  ;;  %v165_v20 = vsub.s32 0, %v164_v17  ;;  %v173_v21 = vsub.s32 2, %v164_v17  ;;  %v169_v22 = vsub.s32 1, %v164_v17  ;;  %v177_v23 = vsub.s32 3, %v164_v17 }
  0x35   :  { %308 = vmatpush1.msra.mxu0 %v155_v5  ;;  %237 = vmatpush1.msra.mxu1 %v153_v6  ;;  %v161_v24 = vld [vmem:[#allocation8] sm:$0xff]  ;;  %v181_v25 = vsub.s32 4, %v164_v17  ;;  %v502_v26 = vunpack.c.0.s8 %v501_v19  ;;  %v189_v27 = vsub.s32 6, %v164_v17  ;;  %v185_v28 = vsub.s32 5, %v164_v17  ;;  %v69_v1 = vld [vmem:[#allocation2 + $0x8] sm:$0xff]  ;;  %s691_s2 = smov [#allocation10]  }
  0x36   :  { %378 = vmatprep.subr.mxu1 %v158_v7  ;;  %449 = vmatprep.subr.mxu0 %v160_v8  ;;  %v193_v29 = vsub.s32 7, %v164_v17  ;;  %v166_v30 = vrot.slane %v161_v24, %v165_v20  ;;  %v174_v31 = vrot.slane %v161_v24, %v173_v21  ;;  %v170_v32 = vrot.slane %v161_v24, %v169_v22  ;;  %s544_s11 = sshll.u32 %s691_s2, 4  ;;  %s545_s11 = int_to_ptr.vmem [resolvable:$true] %s544_s11 }
  0x37   :  { %v178_v33 = vrot.slane %v161_v24, %v177_v23  ;;  %v182_v36 = vrot.slane %v161_v24, %v181_v25  ;;  %v505_v38 = vsub.s32 %v502_v26, %v164_v17  ;;  %v190_v40 = vrot.slane %v161_v24, %v189_v27  ;;  %s656_s12 = scalar_lea.vmem %s545_s11, 256  ;;  %p661_p7 = scmp.lt.s32.totalorder %s545_s11, %s545_s11 }
  0x38   :  { %v186_v41 = vrot.slane %v161_v24, %v185_v28  ;;  %v194_v42 = vrot.slane %v161_v24, %v193_v29  ;;  %p657_p6 = scmp.ne.s32.totalorder %s545_s11, %s656_s12  ;;  %p662_p8 = scmp.lt.s32.totalorder %s656_s12, %s656_s12 }
  0x3a   :  { %p663_p9 = por %p662_p8, %p661_p7 }
  0x3c   :  { %p664_p10 = pnand %p663_p9, %p657_p6 }
  0xf3   :  { %v148_v10 = vpop.f32.mrf.mxu0 }
  0xf4   :  { %v149_v11 = vadd.f32 %v555_v9, %v148_v10 }
  0xf5   :  { %v567_v12 = vpop.f32.mrf.mxu0 }
  0xf6   :  { %v152_v13 = vmax.f32 %v149_v11, 0.0 }
  0xf8   :  { %557 = vmatmul.mubr.msk.f32.vlgmr.msra.gmra.mxu1 %vm78_vm1, %v152_v13  ;;  %558 = vmatmul.mubr.msk.f32.vlgmr.msra.gmra.mxu0 %vm78_vm1, %v152_v13 }
  0xf9   :  { %379 = vmatpush1.msra.mxu1 %v157_v14  ;;  %450 = vmatpush1.msra.mxu0 %v159_v15 }
  0xfa   :  { %412 = vmatprep.mubr.f32.mxu1 %v688_v0  ;;  %483 = vmatprep.mubr.f32.mxu0 %v688_v0 }
  0xfc   :  { %559 = vmatmul.mubr.msk.f32.vlgmr.msra.gmra.mxu1 %vm78_vm1, %v152_v13  ;;  %560 = vmatmul.mubr.msk.f32.vlgmr.msra.gmra.mxu0 %vm78_vm1, %v152_v13 }
 0x1b8   :  { %v272_v34 = vpop.f32.mrf.mxu1  ;;  %v343_v35 = vpop.f32.mrf.mxu0 }
 0x1b9   :  { %v273_v43 = vadd.f32 %v272_v34, %v166_v30  ;;  %v344_v44 = vadd.f32 %v343_v35, %v174_v31 }
 0x1ba   :  { %v274_v37 = vpop.f32.mrf.mxu1  ;;  %v345_v39 = vpop.f32.mrf.mxu0 }
 0x1bb   :  { %v275_v45 = vadd.f32 %v274_v37, %v170_v32  ;;  %v346_v46 = vadd.f32 %v345_v39, %v178_v33 }
 0x1bc   :  { %v414_v47 = vpop.f32.mrf.mxu1  ;;  %v485_v48 = vpop.f32.mrf.mxu0 }
 0x1bd   :  { %v498_v49 = vcombine.low %v273_v43, %v275_v45  ;;  %v499_v50 = vcombine.low %v344_v44, %v346_v46  ;;  %v415_v51 = vadd.f32 %v414_v47, %v182_v36  ;;  %v486_v52 = vadd.f32 %v485_v48, %v190_v40 }
 0x1be   :  { %v416_v53 = vpop.f32.mrf.mxu1  ;;  %v487_v54 = vpop.f32.mrf.mxu0 }
 0x1bf   :  { %v506_v55 = vrot.slane %v498_v49, %v505_v38  ;;  %v513_v56 = vrot.slane %v499_v50, %v505_v38  ;;  %v417_v57 = vadd.f32 %v416_v53, %v186_v41  ;;  %v488_v58 = vadd.f32 %v487_v54, %v194_v42 }
 0x1c1   :  { %v514_v59 = vcombine.low %v506_v55, %v513_v56  ;;  %v515_v60 = vcombine.low %v415_v51, %v417_v57  ;;  %v516_v61 = vcombine.low %v486_v52, %v488_v58 }
 0x1c3   :  { %v523_v62 = vrot.slane %v515_v60, %v505_v38  ;;  %v530_v63 = vrot.slane %v516_v61, %v505_v38  ;;  %v534_v0 = vadd.f32 %v514_v59, %v734_v2 }
 0x1c5   :  { %v531_v3 = vcombine.low %v523_v62, %v530_v63  ;;  %536 = vst [vmem:[#allocation10] sm:$0xff] %v534_v0 }
 0x1c7   :  { %v535_v4 = vadd.f32 %v531_v3, %v69_v1 }
 0x1c9   :  { %537 = vst [vmem:[#allocation10 + $0x8] sm:$0xff] %v535_v4 }
 0x1ca   :  { %667 = shalt.err (!%p664_p10)
}
 0x1cb   :  { %547 = dma.vmem_to_hbm [thread:$0]  %s545_s11, 256, %s754_s5, [#allocation4]  }
 0x1cc   :  { %682 = dma.done.wait [#allocation4], 256  }
 0x1cd   :  { %683 = vsyncadd [#allocation4], 4294967040 }
 0x1ce   :  { %551 = vsyncpa [#allocation3], 1 }
 0x1cf   :  { %552 = vsyncpa [#allocation6], 1 }
 0x1d0   :  { %553 = vsyncpa [#allocation9], 1 }
 0x1d1   :  { %554 = vsyncpa [#allocation4], 1 }

</bundles_post_ra>
